<compile_context>
chip_gen: v5e
topology: v5e:2x2
jax: 0.10.0
libtpu: 0.0.40
codegen_flags: <defaults>
</compile_context>

<pallas_src>
import jax
import jax.numpy as jnp
from jax.experimental import pallas as pl
from jax.experimental.pallas import tpu as pltpu

NEG_SLOPE = 0.01          # F.leaky_relu default negative_slope
H1_PAD = 128              # 120 -> 128
H2_PAD = 128              # 84  -> 128
TB_DEFAULT = 512          # batch tile (multiple of 256: fills v6e/v5e MXU rows)


def _leaky_relu(x):
    return jnp.where(x > 0, x, NEG_SLOPE * x)


def _round_up(n, m):
    return ((n + m - 1) // m) * m


def agent_net_kernel(x_ref, w1_ref, b1_ref, w2_ref, b2_ref, w3_ref, b3_ref, o_ref):
    # x: (TB, obs) bf16; weights bf16; biases f32; all compute on f32 accumulators.
    x = x_ref[...]
    h1 = jnp.dot(x, w1_ref[...], preferred_element_type=jnp.float32)
    h1 = _leaky_relu(h1 + b1_ref[...]).astype(jnp.bfloat16)

    h2 = jnp.dot(h1, w2_ref[...], preferred_element_type=jnp.float32)
    h2 = _leaky_relu(h2 + b2_ref[...]).astype(jnp.bfloat16)

    out = jnp.dot(h2, w3_ref[...], preferred_element_type=jnp.float32) + b3_ref[...]
    o_ref[...] = out.astype(o_ref.dtype)


def prep_params(params):
    """Zero-pad hidden dims to 128 and cast weights to bf16 (biases stay f32)."""
    obs = params["w1"].shape[0]
    act = params["w3"].shape[1]
    h1, h2 = params["w1"].shape[1], params["w2"].shape[1]

    w1 = jnp.zeros((obs, H1_PAD), jnp.float32).at[:, :h1].set(params["w1"])
    b1 = jnp.zeros((1, H1_PAD), jnp.float32).at[:, :h1].set(params["b1"])
    w2 = jnp.zeros((H1_PAD, H2_PAD), jnp.float32).at[:h1, :h2].set(params["w2"])
    b2 = jnp.zeros((1, H2_PAD), jnp.float32).at[:, :h2].set(params["b2"])
    w3 = jnp.zeros((H2_PAD, act), jnp.float32).at[:h2, :].set(params["w3"])
    b3 = params["b3"].astype(jnp.float32)

    return {
        "w1": w1.astype(jnp.bfloat16), "b1": b1,
        "w2": w2.astype(jnp.bfloat16), "b2": b2,
        "w3": w3.astype(jnp.bfloat16), "b3": b3,
    }


def agent_net_forward(x, prepped, tb=TB_DEFAULT):
    """x: (B, obs) float32. prepped: output of prep_params()."""
    B, obs = x.shape
    A = prepped["w3"].shape[1]

    TB = min(tb, _round_up(B, 8))            # tile height, multiple of 8
    Bp = _round_up(B, TB)                    # padded batch
    if Bp != B:
        x = jnp.pad(x, ((0, Bp - B), (0, 0)))
    xb = x.astype(jnp.bfloat16)

    grid = (Bp // TB,)
    const2 = lambda i: (0, 0)                # weights/biases: resident across grid
    w1, b1, w2, b2, w3, b3 = (prepped["w1"], prepped["b1"], prepped["w2"],
                              prepped["b2"], prepped["w3"], prepped["b3"])

    flops = 2 * Bp * (obs * H1_PAD + H1_PAD * H2_PAD + H2_PAD * A)
    bytes_accessed = (xb.size * 2 + Bp * A * 4
                      + sum(int(p.size) * p.dtype.itemsize for p in
                            (w1, b1, w2, b2, w3, b3)))

    out = pl.pallas_call(
        agent_net_kernel,
        out_shape=jax.ShapeDtypeStruct((Bp, A), jnp.float32),
        grid=grid,
        in_specs=[
            pl.BlockSpec((TB, obs), lambda i: (i, 0)),       # x: batch-tiled
            pl.BlockSpec(w1.shape, const2),
            pl.BlockSpec(b1.shape, const2),
            pl.BlockSpec(w2.shape, const2),
            pl.BlockSpec(b2.shape, const2),
            pl.BlockSpec(w3.shape, const2),
            pl.BlockSpec(b3.shape, const2),
        ],
        out_specs=pl.BlockSpec((TB, A), lambda i: (i, 0)),
        compiler_params=pltpu.CompilerParams(
            dimension_semantics=("parallel",)),
        cost_estimate=pl.CostEstimate(flops=flops, transcendentals=0,
                                      bytes_accessed=bytes_accessed),
    )(xb, w1, b1, w2, b2, w3, b3)

    return out[:B]


def init_params(key, observation_space, action_space):
    """Deterministic init matching PyTorch Linear's U(-1/sqrt(fan_in), 1/sqrt(fan_in)).
    Weights stored as (in, out) = PyTorch weight (out, in) transposed."""
    dims = [(observation_space, 120), (120, 84), (84, action_space)]
    params = {}
    for i, (fan_in, fan_out) in enumerate(dims, start=1):
        key, kw, kb = jax.random.split(key, 3)
        bound = 1.0 / jnp.sqrt(float(fan_in))
        params[f"w{i}"] = jax.random.uniform(
            kw, (fan_in, fan_out), jnp.float32, -bound, bound)
        params[f"b{i}"] = jax.random.uniform(
            kb, (1, fan_out), jnp.float32, -bound, bound)
    return params


def reference_forward_bf16(x, prepped):
    """Same math as the kernel (bf16 operands, f32 accumulate) in plain JAX."""
    xb = x.astype(jnp.bfloat16)
    h1 = _leaky_relu(
        jnp.dot(xb, prepped["w1"], preferred_element_type=jnp.float32) + prepped["b1"]
    ).astype(jnp.bfloat16)
    h2 = _leaky_relu(
        jnp.dot(h1, prepped["w2"], preferred_element_type=jnp.float32) + prepped["b2"]
    ).astype(jnp.bfloat16)
    return jnp.dot(h2, prepped["w3"], preferred_element_type=jnp.float32) + prepped["b3"]


def reference_forward_f32(x, params):
    h1 = _leaky_relu(x @ params["w1"] + params["b1"])
    h2 = _leaky_relu(h1 @ params["w2"] + params["b2"])
    return h2 @ params["w3"] + params["b3"]


if __name__ == "__main__":
    observation_space = 32
    action_space = 8
    batch = 8

    key = jax.random.PRNGKey(0)
    key, kx = jax.random.split(key)
    x = jax.random.normal(kx, (batch, observation_space), jnp.float32)
    params = init_params(key, observation_space, action_space)
    prepped = prep_params(params)

    out = agent_net_forward(x, prepped)
    out = jax.block_until_ready(out)
    assert out.shape == (batch, action_space)

    # Exact-math reference (bf16 operands, f32 accumulation) -> tight tolerance.
    ref_bf16 = reference_forward_bf16(x, prepped)
    assert jnp.allclose(out, ref_bf16, atol=1e-3, rtol=1e-3), "mismatch vs bf16 reference"

    # Original f32 module semantics -> loose tolerance (bf16 quantization error).
    ref_f32 = reference_forward_f32(x, params)
    assert jnp.allclose(out, ref_f32, atol=5e-2, rtol=5e-2), "mismatch vs f32 reference"

    print("KERNEL_OK")
</pallas_src>

<mosaic_0001>
module attributes {stable_mosaic.version = 11 : i64} {
  func.func @agent_net_kernel(%arg0: i32, %arg1: memref<8x32xbf16, #tpu.memory_space<vmem>>, %arg2: memref<32x128xbf16, #tpu.memory_space<vmem>>, %arg3: memref<1x128xf32, #tpu.memory_space<vmem>>, %arg4: memref<128x128xbf16, #tpu.memory_space<vmem>>, %arg5: memref<1x128xf32, #tpu.memory_space<vmem>>, %arg6: memref<128x8xbf16, #tpu.memory_space<vmem>>, %arg7: memref<1x8xf32, #tpu.memory_space<vmem>>, %arg8: memref<8x8xf32, #tpu.memory_space<vmem>>) attributes {dimension_semantics = [#tpu.dimension_semantics<parallel>], iteration_bounds = array<i64: 1>, scalar_prefetch = 0 : i64, scratch_operands = 0 : i64, tpu.core_type = #tpu.core_type<tc>, window_params = [{transform_indices = @transform_0, window_bounds = array<i64: 8, 32>}, {pipeline_mode = #tpu.pipeline_mode<synchronous>, transform_indices = @transform_1, window_bounds = array<i64: 32, 128>}, {pipeline_mode = #tpu.pipeline_mode<synchronous>, transform_indices = @transform_2, window_bounds = array<i64: 1, 128>}, {pipeline_mode = #tpu.pipeline_mode<synchronous>, transform_indices = @transform_3, window_bounds = array<i64: 128, 128>}, {pipeline_mode = #tpu.pipeline_mode<synchronous>, transform_indices = @transform_4, window_bounds = array<i64: 1, 128>}, {pipeline_mode = #tpu.pipeline_mode<synchronous>, transform_indices = @transform_5, window_bounds = array<i64: 128, 8>}, {pipeline_mode = #tpu.pipeline_mode<synchronous>, transform_indices = @transform_6, window_bounds = array<i64: 1, 8>}, {transform_indices = @transform_7, window_bounds = array<i64: 8, 8>}]} {
    %c0 = arith.constant 0 : index
    %c0_0 = arith.constant 0 : index
    %0 = vector.load %arg1[%c0, %c0_0] : memref<8x32xbf16, #tpu.memory_space<vmem>>, vector<8x32xbf16>
    %c0_1 = arith.constant 0 : index
    %c0_2 = arith.constant 0 : index
    %1 = vector.load %arg2[%c0_1, %c0_2] : memref<32x128xbf16, #tpu.memory_space<vmem>>, vector<32x128xbf16>
    %cst = arith.constant dense<0.000000e+00> : vector<8x128xf32>
    %2 = tpu.matmul %0, %1, %cst {dimension_numbers = #tpu.dot_dimension_numbers<[1], [0], [0], [1], [0, 0, 1, 1], [], []>} : vector<8x32xbf16>, vector<32x128xbf16>, vector<8x128xf32> -> vector<8x128xf32>
    %c0_3 = arith.constant 0 : index
    %c0_4 = arith.constant 0 : index
    %3 = vector.load %arg3[%c0_3, %c0_4] : memref<1x128xf32, #tpu.memory_space<vmem>>, vector<1x128xf32>
    %4 = vector.broadcast %3 : vector<1x128xf32> to vector<8x128xf32>
    %5 = arith.addf %2, %4 : vector<8x128xf32>
    %cst_5 = arith.constant 0.000000e+00 : f32
    %6 = vector.broadcast %cst_5 : f32 to vector<8x128xf32>
    %7 = arith.cmpf ogt, %5, %6 : vector<8x128xf32>
    %cst_6 = arith.constant 0.00999999977 : f32
    %8 = vector.broadcast %cst_6 : f32 to vector<8x128xf32>
    %9 = arith.mulf %8, %5 : vector<8x128xf32>
    %10 = arith.select %7, %5, %9 : vector<8x128xi1>, vector<8x128xf32>
    %11 = arith.truncf %10 : vector<8x128xf32> to vector<8x128xbf16>
    %c0_7 = arith.constant 0 : index
    %c0_8 = arith.constant 0 : index
    %12 = vector.load %arg4[%c0_7, %c0_8] : memref<128x128xbf16, #tpu.memory_space<vmem>>, vector<128x128xbf16>
    %cst_9 = arith.constant dense<0.000000e+00> : vector<8x128xf32>
    %13 = tpu.matmul %11, %12, %cst_9 {dimension_numbers = #tpu.dot_dimension_numbers<[1], [0], [0], [1], [0, 0, 1, 1], [], []>} : vector<8x128xbf16>, vector<128x128xbf16>, vector<8x128xf32> -> vector<8x128xf32>
    %c0_10 = arith.constant 0 : index
    %c0_11 = arith.constant 0 : index
    %14 = vector.load %arg5[%c0_10, %c0_11] : memref<1x128xf32, #tpu.memory_space<vmem>>, vector<1x128xf32>
    %15 = vector.broadcast %14 : vector<1x128xf32> to vector<8x128xf32>
    %16 = arith.addf %13, %15 : vector<8x128xf32>
    %cst_12 = arith.constant 0.000000e+00 : f32
    %17 = vector.broadcast %cst_12 : f32 to vector<8x128xf32>
    %18 = arith.cmpf ogt, %16, %17 : vector<8x128xf32>
    %cst_13 = arith.constant 0.00999999977 : f32
    %19 = vector.broadcast %cst_13 : f32 to vector<8x128xf32>
    %20 = arith.mulf %19, %16 : vector<8x128xf32>
    %21 = arith.select %18, %16, %20 : vector<8x128xi1>, vector<8x128xf32>
    %22 = arith.truncf %21 : vector<8x128xf32> to vector<8x128xbf16>
    %c0_14 = arith.constant 0 : index
    %c0_15 = arith.constant 0 : index
    %23 = vector.load %arg6[%c0_14, %c0_15] : memref<128x8xbf16, #tpu.memory_space<vmem>>, vector<128x8xbf16>
    %cst_16 = arith.constant dense<0.000000e+00> : vector<8x8xf32>
    %24 = tpu.matmul %22, %23, %cst_16 {dimension_numbers = #tpu.dot_dimension_numbers<[1], [0], [0], [1], [0, 0, 1, 1], [], []>} : vector<8x128xbf16>, vector<128x8xbf16>, vector<8x8xf32> -> vector<8x8xf32>
    %c0_17 = arith.constant 0 : index
    %c0_18 = arith.constant 0 : index
    %25 = vector.load %arg7[%c0_17, %c0_18] : memref<1x8xf32, #tpu.memory_space<vmem>>, vector<1x8xf32>
    %26 = vector.broadcast %25 : vector<1x8xf32> to vector<8x8xf32>
    %27 = arith.addf %24, %26 : vector<8x8xf32>
    %c0_19 = arith.constant 0 : index
    %c0_20 = arith.constant 0 : index
    %28 = vector.load %arg8[%c0_19, %c0_20] : memref<8x8xf32, #tpu.memory_space<vmem>>, vector<8x8xf32>
    tpu.vector_store %arg8[%c0_19, %c0_20], %27 {strides = array<i32>} : memref<8x8xf32, #tpu.memory_space<vmem>>, vector<8x8xf32>,
    return
  }
  func.func @transform_0(%arg0: i32) -> (i32, i32) {
    %c0_i32 = arith.constant 0 : i32
    %c0_i32_0 = arith.constant 0 : i32
    return %arg0, %c0_i32 : i32, i32
  }
  func.func @transform_1(%arg0: i32) -> (i32, i32) {
    %c0_i32 = arith.constant 0 : i32
    %c0_i32_0 = arith.constant 0 : i32
    %c0_i32_1 = arith.constant 0 : i32
    return %c0_i32, %c0_i32_0 : i32, i32
  }
  func.func @transform_2(%arg0: i32) -> (i32, i32) {
    %c0_i32 = arith.constant 0 : i32
    %c0_i32_0 = arith.constant 0 : i32
    %c0_i32_1 = arith.constant 0 : i32
    return %c0_i32, %c0_i32_0 : i32, i32
  }
  func.func @transform_3(%arg0: i32) -> (i32, i32) {
    %c0_i32 = arith.constant 0 : i32
    %c0_i32_0 = arith.constant 0 : i32
    %c0_i32_1 = arith.constant 0 : i32
    return %c0_i32, %c0_i32_0 : i32, i32
  }
  func.func @transform_4(%arg0: i32) -> (i32, i32) {
    %c0_i32 = arith.constant 0 : i32
    %c0_i32_0 = arith.constant 0 : i32
    %c0_i32_1 = arith.constant 0 : i32
    return %c0_i32, %c0_i32_0 : i32, i32
  }
  func.func @transform_5(%arg0: i32) -> (i32, i32) {
    %c0_i32 = arith.constant 0 : i32
    %c0_i32_0 = arith.constant 0 : i32
    %c0_i32_1 = arith.constant 0 : i32
    return %c0_i32, %c0_i32_0 : i32, i32
  }
  func.func @transform_6(%arg0: i32) -> (i32, i32) {
    %c0_i32 = arith.constant 0 : i32
    %c0_i32_0 = arith.constant 0 : i32
    %c0_i32_1 = arith.constant 0 : i32
    return %c0_i32, %c0_i32_0 : i32, i32
  }
  func.func @transform_7(%arg0: i32) -> (i32, i32) {
    %c0_i32 = arith.constant 0 : i32
    %c0_i32_0 = arith.constant 0 : i32
    return %arg0, %c0_i32 : i32, i32
  }
}

</mosaic_0001>

<bundles_post_ra>
// kernel: tpu_custom_call.1
= control target key start
LH: loop header
LB: loop body
LE: loop exit
PB: predicated region body
PF: predicated region fallthrough
CT: control target
= control target key end

     0   :  { %12 = vsyncpa [#allocation3], 0  ;;  %s613_s0 = inlined_call_operand.vmem [shape: bf16[8,32], index: 0, kind: input, shape index: {}]   ;;  %s614_s1 = inlined_call_operand.hbm [shape: bf16[32,128], index: 1, kind: input, shape index: {}]   ;;  %s615_s2 = inlined_call_operand.hbm [shape: f32[1,128], index: 2, kind: input, shape index: {}]   ;;  %s616_s3 = inlined_call_operand.vmem [shape: bf16[128,128], index: 3, kind: input, shape index: {}]   ;;  %s617_s4 = inlined_call_operand.hbm [shape: f32[1,128], index: 4, kind: input, shape index: {}]   ;;  %s618_s5 = inlined_call_operand.vmem [shape: bf16[128,8], index: 5, kind: input, shape index: {}]   ;;  %s619_s6 = inlined_call_operand.vmem [shape: f32[1,8], index: 6, kind: input, shape index: {}]   ;;  %s620_s7 = inlined_call_operand.hbm [shape: f32[8,8], index: 7, kind: output, shape index: {}]  }
   0x1   :  { %13 = vsyncpa [#allocation6], 0  ;;  %s35_s26 = sshll.u32 %s615_s2, 4  ;;  %s36_s26 = int_to_ptr.hbm [resolvable:$true] %s35_s26 }
   0x2   :  { %14 = vsyncpa [#allocation4], 0  ;;  %s501_s27 = smov [#allocation5]   ;;  %s21_s8 = sshll.u32 %s614_s1, 4  ;;  %s22_s8 = int_to_ptr.hbm [resolvable:$true] %s21_s8 }
   0x3   :  { %s37_s28 = sshll.u32 %s501_s27, 4  ;;  %s502_s9 = smov [#allocation2]   ;;  %s38_s28 = int_to_ptr.vmem [resolvable:$true] %s37_s28 }
   0x4   :  { %40 = dma.hbm_to_vmem [thread:$0]  %s36_s26, 16, %s38_s28, [#allocation6]  }
   0x5   :  { %s23_s10 = sshll.u32 %s502_s9, 4  ;;  %s503_s11 = smov 64   ;;  %s24_s10 = int_to_ptr.vmem [resolvable:$true] %s23_s10 }
   0x6   :  { %s504_s12 = smov 4   ;;  %s48_s2 = sshll.u32 %s617_s4, 4  ;;  %s49_s2 = int_to_ptr.hbm [resolvable:$true] %s48_s2 }
   0x7   :  { %29 = dma.hbm_to_vmem [thread:$0]  %s22_s8, 256, %s24_s10, [#allocation3], %s503_s11, %s503_s11, %s504_s12  }
   0x8   :  { %s505_s15 = smov [#allocation7]  }
   0x9   :  { %s50_s16 = sshll.u32 %s505_s15, 4  ;;  %s51_s16 = int_to_ptr.vmem [resolvable:$true] %s50_s16 }
   0xa   :  { %53 = dma.hbm_to_vmem [thread:$0]  %s49_s2, 16, %s51_s16, [#allocation6]  }
   0xb   :  { %495 = dma.done.wait [#allocation3], 256  }
   0xc   :  { %496 = vsyncadd [#allocation3], 4294967040 }
   0xd   :  { %497 = dma.done.wait [#allocation6], 32  }
   0xe   :  { %498 = vsyncadd [#allocation6], 4294967264  ;;  %v373_v0 = vld [vmem:[#allocation2 + $0x8] sm:$0xff]  ;;  %v381_v1 = vld [vmem:[%s616_s3 + $0x38] sm:$0xff]  ;;  %vm92_vm0 = vcmask 261120   ;;  %s506_s23 = smov [#allocation8]  }
   0xf   :  { %102 = vmatpush.bf16.msra.mxu0 %v373_v0  ;;  %v372_v2 = vld [vmem:[#allocation2] sm:$0xff]  ;;  %181 = vmatpush.bf16.msra.mxu1 %v381_v1  ;;  %v380_v3 = vld [vmem:[%s616_s3 + $0x30] sm:$0xff]  ;;  %v379_v5 = vld [vmem:[%s616_s3 + $0x28] sm:$0xff]  ;;  %s286_s24 = sshll.u32 %s506_s23, 4  ;;  %vm279_vm3 = vcmask 64512   ;;  %s287_s24 = int_to_ptr.vmem [resolvable:$true] %s286_s24 }
  0x10   :  { %v71_v4 = vld [vmem:[%s613_s0] sm:$0xf]  ;;  %v377_v7 = vld [vmem:[%s616_s3 + $0x18] sm:$0xff]  ;;  %v376_v8 = vld [vmem:[%s616_s3 + $0x10] sm:$0xff] }
  0x11   :  { %v378_v6 = vld [vmem:[%s616_s3 + $0x20] sm:$0xff]  ;;  %v375_v9 = vld [vmem:[%s616_s3 + $0x8] sm:$0xff]  ;;  %v389_v11 = vld [vmem:[%s618_s5 + $0x38] sm:$0xff] }
  0x12   :  { %v374_v10 = vld [vmem:[%s616_s3] sm:$0xff]  ;;  %266 = vmatpush.bf16.msra.mxu2 %v389_v11  ;;  %v388_v12 = vld [vmem:[%s618_s5 + $0x30] sm:$0xff]  ;;  %v387_v13 = vld [vmem:[%s618_s5 + $0x28] sm:$0xff] }
  0x13   :  { %103 = vmatpush.bf16.msra.mxu0 %v372_v2  ;;  %182 = vmatpush.bf16.msra.mxu1 %v380_v3  ;;  %v386_v14 = vld [vmem:[%s618_s5 + $0x20] sm:$0xff]  ;;  %v385_v15 = vld [vmem:[%s618_s5 + $0x18] sm:$0xff]  ;;  %v384_v16 = vld [vmem:[%s618_s5 + $0x10] sm:$0xff] }
  0x14   :  { %v396_v17 = vld [vmem:[#allocation5] ss:$0 sm:$0xff]  ;;  %v383_v24 = vld [vmem:[%s618_s5 + $0x8] sm:$0xff]  ;;  %v382_v25 = vld [vmem:[%s618_s5] sm:$0xff]  ;;  %s288_s5 = sshll.u32 %s620_s7, 4  ;;  %s289_s5 = int_to_ptr.hbm [resolvable:$true] %s288_s5 }
  0x15   :  { %v397_v26 = vld [vmem:[#allocation7] ss:$0 sm:$0xff]  ;;  %v398_v33 = vld [vmem:[%s619_s6] ss:$0 sm:$0xff] }
  0x16   :  { %307 = vmatmul.msk.bf16.vlgmr.msra.gmra.mxu0 %vm92_vm0, %v71_v4  ;;  %267 = vmatpush.bf16.msra.mxu2 %v388_v12 }
  0x17   :  { %183 = vmatpush.bf16.msra.mxu1 %v379_v5 }
  0x1a   :  { %268 = vmatpush.bf16.msra.mxu2 %v387_v13 }
  0x1b   :  { %184 = vmatpush.bf16.msra.mxu1 %v378_v6 }
  0x1e   :  { %269 = vmatpush.bf16.msra.mxu2 %v386_v14 }
  0x1f   :  { %185 = vmatpush.bf16.msra.mxu1 %v377_v7 }
  0x22   :  { %270 = vmatpush.bf16.msra.mxu2 %v385_v15 }
  0x23   :  { %186 = vmatpush.bf16.msra.mxu1 %v376_v8 }
  0x26   :  { %271 = vmatpush.bf16.msra.mxu2 %v384_v16 }
  0x27   :  { %187 = vmatpush.bf16.msra.mxu1 %v375_v9 }
  0x2a   :  { %272 = vmatpush.bf16.msra.mxu2 %v383_v24 }
  0x2b   :  { %188 = vmatpush.bf16.msra.mxu1 %v374_v10 }
  0x2e   :  { %273 = vmatpush.bf16.msra.mxu2 %v382_v25 }
  0x93   :  { %v105_v18 = vpop.f32.mrf.mxu0 }
  0x94   :  { %v106_v19 = vadd.f32 %v396_v17, %v105_v18 }
  0x96   :  { %v110_v20 = vmul.f32 0.01, %v106_v19  ;;  %vm109_vm1 = vcmp.gt.f32.partialorder %v106_v19, 0.0 }
  0x98   :  { %v111_v21 = vsel %vm109_vm1, %v106_v19, %v110_v20 }
  0x99   :  { %v112_v22 = vpack.c.bf16 %v111_v21, %v111_v21 }
  0x9b   :  { %v107_v23 = vpop.f32.mrf.mxu0  ;;  %189 = vmatmul.bf16.vlgmr.msra.gmra.mxu1 %v112_v22 }
 0x118   :  { %v190_v27 = vpop.f32.mrf.mxu1 }
 0x119   :  { %v191_v28 = vadd.f32 %v397_v26, %v190_v27 }
 0x11b   :  { %v195_v29 = vmul.f32 0.01, %v191_v28  ;;  %vm194_vm2 = vcmp.gt.f32.partialorder %v191_v28, 0.0 }
 0x11d   :  { %v196_v30 = vsel %vm194_vm2, %v191_v28, %v195_v29 }
 0x11e   :  { %v197_v31 = vpack.c.bf16 %v196_v30, %v196_v30 }
 0x120   :  { %v192_v32 = vpop.f32.mrf.mxu1  ;;  %274 = vmatmul.bf16.vlgmr.msra.gmra.mxu2 %v197_v31 }
 0x1a3   :  { %v275_v34 = vpop.f32.mrf.mxu2 }
 0x1a4   :  { %v276_v35 = vadd.f32 %v398_v33, %v275_v34 }
 0x1a6   :  { %280 = vst.msk [vmem:[#allocation8] sm:$0xff] %vm279_vm3, %v276_v35 }
 0x1a7   :  { %291 = dma.vmem_to_hbm [thread:$0]  %s287_s24, 128, %s289_s5, [#allocation4]  }
 0x1ab   :  { %v277_v36 = vpop.f32.mrf.mxu2 }
 0x1ac   :  { %499 = dma.done.wait [#allocation4], 128  }
 0x1ad   :  { %500 = vsyncadd [#allocation4], 4294967168 }
 0x1ae   :  { %296 = vsyncpa [#allocation3], 1 }
 0x1af   :  { %297 = vsyncpa [#allocation6], 1 }
 0x1b0   :  { %298 = vsyncpa [#allocation4], 1 }

</bundles_post_ra>
